<compile_context>
chip_gen: v6e
topology: v6e:2x2x1
jax: 0.10.0
libtpu: 0.0.40
codegen_flags: <defaults>
</compile_context>

<pallas_src>
import jax
import jax.numpy as jnp
from jax.experimental import pallas as pl
from jax.experimental.pallas import tpu as pltpu


def _round_up(a, b):
    return (a + b - 1) // b * b


# --------------------------------------------------------------------------
# Kernels
# --------------------------------------------------------------------------
def _make_kernel(heads_per_block, head_dim, apply_rotation, pairwise):
    D = head_dim
    HB = heads_per_block

    if not apply_rotation:
        def kernel(x_ref, w_ref, b_ref, o_ref, acc_ref):
            k = pl.program_id(2)

            @pl.when(k == 0)
            def _init():
                # Fold the bias into the accumulator init (added exactly once).
                acc_ref[...] = jnp.broadcast_to(
                    b_ref[...].astype(jnp.float32), acc_ref.shape)

            # Lane-dense matmul against the pre-transposed weight tile.
            acc_ref[...] += jnp.dot(x_ref[...], w_ref[...],
                                    preferred_element_type=jnp.float32)

            @pl.when(k == pl.num_programs(2) - 1)
            def _finalize():
                o_ref[...] = acc_ref[...].astype(o_ref.dtype)

        return kernel

    if pairwise:
        P = 2 * D              # two heads per rotation matmul (256-lane RHS)
        NP = HB // 2

        def kernel(x_ref, w_ref, b_ref, r_ref, o_ref, acc_ref):
            k = pl.program_id(2)

            @pl.when(k == 0)
            def _init():
                acc_ref[...] = jnp.broadcast_to(
                    b_ref[...].astype(jnp.float32), acc_ref.shape)

            acc_ref[...] += jnp.dot(x_ref[...], w_ref[...],
                                    preferred_element_type=jnp.float32)

            @pl.when(k == pl.num_programs(2) - 1)
            def _finalize():
                # Per-head rotation, batched two heads per MXU call through a
                # block-diagonal (2D, 2D) R tile. Compute dtype = R's dtype
                # (bf16 for bf16 models), accumulation in f32.
                for p in range(NP):
                    yp = acc_ref[:, p * P:(p + 1) * P].astype(r_ref.dtype)
                    o_ref[:, p * P:(p + 1) * P] = jnp.dot(
                        yp, r_ref[p],
                        preferred_element_type=jnp.float32).astype(o_ref.dtype)

        return kernel

    def kernel(x_ref, w_ref, b_ref, r_ref, o_ref, acc_ref):
        k = pl.program_id(2)

        @pl.when(k == 0)
        def _init():
            acc_ref[...] = jnp.broadcast_to(
                b_ref[...].astype(jnp.float32), acc_ref.shape)

        acc_ref[...] += jnp.dot(x_ref[...], w_ref[...],
                                preferred_element_type=jnp.float32)

        @pl.when(k == pl.num_programs(2) - 1)
        def _finalize():
            # Odd head count per block: per-head rotation loop.
            for h in range(HB):
                yh = acc_ref[:, h * D:(h + 1) * D].astype(r_ref.dtype)
                o_ref[:, h * D:(h + 1) * D] = jnp.dot(
                    yh, r_ref[h],
                    preferred_element_type=jnp.float32).astype(o_ref.dtype)

    return kernel


# --------------------------------------------------------------------------
# One-time parameter preparation (amortized: W/R are static parameters)
# --------------------------------------------------------------------------
def prepare_clover_params(weight, bias, clover_R, head_dim, *,
                          apply_rotation=True, fold_rotation=False,
                          hbd_target=512, rotation_dtype=None):
    """Prepare static Clover Linear parameters for the Pallas kernel.

    weight   : (out_features, in_features)   (PyTorch nn.Linear layout)
    bias     : (out_features,) or None
    clover_R : (num_head, head_dim, head_dim) or None
    """
    out_features, in_features = weight.shape
    assert head_dim % 128 == 0, \
        "head_dim must be a multiple of 128 (TPU lane width); head_dim=64 unsupported"  # noqa: E501
    num_head = out_features // head_dim
    assert num_head * head_dim == out_features

    if apply_rotation and fold_rotation:
        # (x W^T + b) R  ==  x (R^T W)^T + b R  -- exact fold (same as merge()).
        Wh = weight.reshape(num_head, head_dim, in_features)
        weight = jnp.einsum('hdk,hde->hek', Wh, clover_R).reshape(
            out_features, in_features)
        if bias is not None:
            bias = jnp.einsum('hd,hde->he',
                              bias.reshape(num_head, head_dim),
                              clover_R).reshape(out_features)
        apply_rotation = False

    # Heads per grid step: largest divisor of num_head with HB*head_dim <= hbd_target.
    max_hb = max(1, hbd_target // head_dim)
    HB = 1
    for cand in range(1, max_hb + 1):
        if num_head % cand == 0:
            HB = cand
    pairwise = apply_rotation and (HB % 2 == 0)

    # One-time weight transpose -> lane-dense (K, N) RHS inside the kernel.
    wt = jnp.asarray(weight).T                       # (in_features, out_features)
    if bias is None:
        b2 = jnp.zeros((1, out_features), dtype=weight.dtype)
    else:
        b2 = jnp.asarray(bias).reshape(1, out_features)

    Rp = None
    if apply_rotation:
        rdt = rotation_dtype if rotation_dtype is not None else clover_R.dtype
        if pairwise:
            D = head_dim
            nh2 = num_head // 2
            R2 = clover_R.reshape(nh2, 2, D, D)
            z = jnp.zeros((nh2, D, D), dtype=clover_R.dtype)
            top = jnp.concatenate([R2[:, 0], z], axis=-1)   # (nh2, D, 2D)
            bot = jnp.concatenate([z, R2[:, 1]], axis=-1)   # (nh2, D, 2D)
            Rp = jnp.concatenate([top, bot], axis=-2).astype(rdt)  # (nh2, 2D, 2D)
        else:
            Rp = clover_R.astype(rdt)

    return dict(wt=wt, b2=b2, Rp=Rp, head_dim=head_dim, num_head=num_head,
                HB=HB, pairwise=pairwise, apply_rotation=apply_rotation)


# --------------------------------------------------------------------------
# Forward
# --------------------------------------------------------------------------
def clover_linear_forward(x, params, *, tm=512, tk=512):
    """Fused Clover Linear forward (decomp=False, cross_head=False path)."""
    wt, b2, Rp = params['wt'], params['b2'], params['Rp']
    head_dim, num_head = params['head_dim'], params['num_head']
    HB, pairwise = params['HB'], params['pairwise']
    apply_rotation = params['apply_rotation']

    bsz, seq, K = x.shape
    Kw, out_features = wt.shape
    assert Kw == K
    M = bsz * seq
    HBD = HB * head_dim

    # ---- K tiling: lane-align, pick TK that divides K_lane exactly ----
    K_lane = _round_up(K, 128)
    tk_cap = max(128, min(tk, K_lane))
    TK = 128
    t = 128
    while t <= tk_cap:
        if K_lane % t == 0:
            TK = t
        t += 128

    # ---- M tiling ----
    TM = min(_round_up(tm, 8), _round_up(M, 8))
    M_pad = _round_up(M, TM)

    # Keep both v7x TensorCores busy: expose >= 2 parallel blocks when possible.
    # TODO(synk): decode shapes (M <= 8) with num_head//HB == 1 still leave one
    # v7x core idle (would need K-axis split across cores).
    while (M_pad // TM) * (num_head // HB) < 2 and TM > 8:
        TM = _round_up(max(8, TM // 2), 8)
        M_pad = _round_up(M, TM)

    # ---- VMEM sizing: real double-buffered working set + f32 accumulator ----
    x_it = jnp.dtype(x.dtype).itemsize
    w_it = jnp.dtype(wt.dtype).itemsize
    b_it = jnp.dtype(b2.dtype).itemsize
    o_it = x_it
    r_blk = 0
    if apply_rotation:
        if pairwise:
            r_blk = (HB // 2) * (2 * head_dim) ** 2 * jnp.dtype(Rp.dtype).itemsize
        else:
            r_blk = HB * head_dim ** 2 * jnp.dtype(Rp.dtype).itemsize

    def _need(tm_):
        tile = (tm_ * TK * x_it + TK * HBD * w_it + 8 * HBD * b_it
                + tm_ * HBD * o_it + r_blk)
        return 2 * tile + tm_ * HBD * 4          # 2x buffered tiles + f32 acc

    while _need(TM) > (40 << 20) and TM > 64:    # stay well inside v7x's 64 MiB
        TM = _round_up(TM // 2, 8)
        M_pad = _round_up(M, TM)
    vmem_need = _need(TM)
    vmem_limit = int(min(max(int(vmem_need * 1.25) + (2 << 20), 12 << 20), 64 << 20))

    # ---- operand prep: pad only when actually needed ----
    x2 = x.reshape(M, K)
    if M_pad != M or K_lane != K:
        x2 = jnp.pad(x2, ((0, M_pad - M), (0, K_lane - K)))
    w = wt
    if K_lane != K:
        w = jnp.pad(wt, ((0, K_lane - K), (0, 0)))

    grid = (M_pad // TM, num_head // HB, K_lane // TK)

    in_specs = [
        pl.BlockSpec((TM, TK), lambda i, h, k: (i, k)),    # x tile
        pl.BlockSpec((TK, HBD), lambda i, h, k: (k, h)),   # pre-transposed W tile
        pl.BlockSpec((1, HBD), lambda i, h, k: (0, h)),    # bias slice
    ]
    inputs = [x2, w, b2]
    if apply_rotation:
        if pairwise:
            P = 2 * head_dim
            in_specs.append(
                pl.BlockSpec((HB // 2, P, P), lambda i, h, k: (h, 0, 0)))
        else:
            in_specs.append(
                pl.BlockSpec((HB, head_dim, head_dim), lambda i, h, k: (h, 0, 0)))
        inputs.append(Rp)

    kernel = _make_kernel(HB, head_dim, apply_rotation, pairwise)

    flops = 2 * M * K * out_features
    if apply_rotation:
        flops += 2 * M * out_features * ((2 * head_dim) if pairwise else head_dim)
    bytes_accessed = (x2.size * x_it * (num_head // HB)
                      + w.size * w_it * (M_pad // TM)
                      + b2.size * b_it
                      + M_pad * out_features * o_it
                      + (Rp.size * jnp.dtype(Rp.dtype).itemsize
                         if apply_rotation else 0))

    out2 = pl.pallas_call(
        kernel,
        out_shape=jax.ShapeDtypeStruct((M_pad, out_features), x.dtype),
        grid_spec=pltpu.PrefetchScalarGridSpec(
            num_scalar_prefetch=0,
            grid=grid,
            in_specs=in_specs,
            out_specs=pl.BlockSpec((TM, HBD), lambda i, h, k: (i, h)),
            scratch_shapes=[pltpu.VMEM((TM, HBD), jnp.float32)],
        ),
        compiler_params=pltpu.CompilerParams(
            dimension_semantics=("parallel", "parallel", "arbitrary"),
            vmem_limit_bytes=vmem_limit),
        cost_estimate=pl.CostEstimate(
            flops=int(flops), transcendentals=0,
            bytes_accessed=int(bytes_accessed)),
    )(*inputs)

    if M_pad != M:
        out2 = out2[:M]
    return out2.reshape(bsz, seq, out_features)


# --------------------------------------------------------------------------
# Pure-JAX reference (matches the PyTorch module forward)
# --------------------------------------------------------------------------
def clover_linear_reference(x, weight, bias, clover_R, head_dim,
                            apply_rotation=True):
    y = jnp.einsum('bsk,ok->bso', x, weight)
    if bias is not None:
        y = y + bias
    if not apply_rotation:
        return y
    bsz, seq, out = y.shape
    nh = out // head_dim
    y = y.reshape(bsz, seq, nh, head_dim)
    y = jnp.einsum('bshd,hde->bshe', y, clover_R)
    return y.reshape(bsz, seq, out)


if __name__ == "__main__":
    keys = jax.random.split(jax.random.PRNGKey(0), 12)

    # ---- test 1: default config (head_dim=128, num_head=2 -> pairwise HB=2) ----
    bsz, seq, Kf, Of, D = 2, 8, 256, 256, 128
    nh = Of // D
    x = jax.random.normal(keys[0], (bsz, seq, Kf), dtype=jnp.float32)
    w = jax.random.normal(keys[1], (Of, Kf), dtype=jnp.float32) * 0.05
    b = jax.random.normal(keys[2], (Of,), dtype=jnp.float32) * 0.1

    # init_clover_weights='eye' (module default)
    R_eye = jnp.tile(jnp.eye(D, dtype=jnp.float32)[None], (nh, 1, 1))
    p_eye = prepare_clover_params(w, b, R_eye, D)
    out = clover_linear_forward(x, p_eye)
    jax.block_until_ready(out)
    ref = clover_linear_reference(x, w, b, R_eye, D)
    assert out.shape == (bsz, seq, Of)
    assert jnp.allclose(out, ref, atol=1e-3, rtol=1e-3), "eye-init mismatch"

    # no-rotation fast path
    p_plain = prepare_clover_params(w, b, None, D, apply_rotation=False)
    out_p = clover_linear_forward(x, p_plain)
    jax.block_until_ready(out_p)
    ref_p = clover_linear_reference(x, w, b, None, D, apply_rotation=False)
    assert jnp.allclose(out_p, ref_p, atol=1e-3, rtol=1e-3), "fast-path mismatch"

    # random rotation, multi-step K accumulation (tk=128 -> 2 K steps)
    R_rand = jax.random.normal(keys[3], (nh, D, D), dtype=jnp.float32) * 0.1
    p_rand = prepare_clover_params(w, b, R_rand, D)
    out_r = clover_linear_forward(x, p_rand, tk=128)
    jax.block_until_ready(out_r)
    ref_r = clover_linear_reference(x, w, b, R_rand, D)
    assert jnp.allclose(out_r, ref_r, atol=1e-3, rtol=1e-3), "random-R mismatch"

    # folded rotation (exact offline fold, runs the plain-Linear kernel)
    p_fold = prepare_clover_params(w, b, R_rand, D, fold_rotation=True)
    out_f = clover_linear_forward(x, p_fold)
    jax.block_until_ready(out_f)
    assert jnp.allclose(out_f, ref_r, atol=1e-3, rtol=1e-3), "folded-R mismatch"

    # ---- test 2: ragged M, ragged K, odd num_head (per-head rotation path) ----
    bsz2, seq2, K2, O2 = 2, 9, 200, 384
    nh2 = O2 // D
    x2 = jax.random.normal(keys[4], (bsz2, seq2, K2), dtype=jnp.float32)
    w2 = jax.random.normal(keys[5], (O2, K2), dtype=jnp.float32) * 0.05
    b2 = jax.random.normal(keys[6], (O2,), dtype=jnp.float32) * 0.1
    R2 = jax.random.normal(keys[7], (nh2, D, D), dtype=jnp.float32) * 0.1
    p2 = prepare_clover_params(w2, b2, R2, D)
    out_b = clover_linear_forward(x2, p2)
    jax.block_until_ready(out_b)
    ref_b = clover_linear_reference(x2, w2, b2, R2, D)
    assert out_b.shape == (bsz2, seq2, O2)
    assert jnp.allclose(out_b, ref_b, atol=1e-3, rtol=1e-3), "ragged/odd-head mismatch"

    # ---- test 3: bf16 model (bf16 MXU base matmul + bf16 rotation, HB=4) ----
    K3, O3 = 512, 512
    nh3 = O3 // D
    x3 = jax.random.normal(keys[8], (bsz, seq, K3), jnp.float32).astype(jnp.bfloat16)
    w3 = (jax.random.normal(keys[9], (O3, K3), jnp.float32) * 0.05).astype(jnp.bfloat16)
    b3 = (jax.random.normal(keys[10], (O3,), jnp.float32) * 0.1).astype(jnp.bfloat16)
    R3 = (jax.random.normal(keys[11], (nh3, D, D), jnp.float32) * 0.1).astype(jnp.bfloat16)
    p3 = prepare_clover_params(w3, b3, R3, D)
    out3 = clover_linear_forward(x3, p3)
    jax.block_until_ready(out3)
    ref3 = clover_linear_reference(x3.astype(jnp.float32), w3.astype(jnp.float32),
                                   b3.astype(jnp.float32), R3.astype(jnp.float32), D)
    assert out3.dtype == jnp.bfloat16
    assert jnp.allclose(out3.astype(jnp.float32), ref3, atol=1e-1, rtol=5e-2), \
        "bf16 mismatch"

    print("KERNEL_OK")
</pallas_src>

<mosaic_0001>
module attributes {stable_mosaic.version = 11 : i64} {
  func.func @kernel(%arg0: i32, %arg1: i32, %arg2: i32, %arg3: memref<8x256xf32, #tpu.memory_space<vmem>>, %arg4: memref<256x256xf32, #tpu.memory_space<vmem>>, %arg5: memref<1x256xf32, #tpu.memory_space<vmem>>, %arg6: memref<1x256x256xf32, #tpu.memory_space<vmem>>, %arg7: memref<8x256xf32, #tpu.memory_space<vmem>>, %arg8: memref<8x256xf32, #tpu.memory_space<vmem>>) attributes {dimension_semantics = [#tpu.dimension_semantics<parallel>, #tpu.dimension_semantics<parallel>, #tpu.dimension_semantics<arbitrary>], iteration_bounds = array<i64: 2, 1, 1>, scalar_prefetch = 0 : i64, scratch_operands = 1 : i64, tpu.core_type = #tpu.core_type<tc>, window_params = [{transform_indices = @transform_0, window_bounds = array<i64: 8, 256>}, {transform_indices = @transform_1, window_bounds = array<i64: 256, 256>}, {transform_indices = @transform_2, window_bounds = array<i64: 1, 256>}, {transform_indices = @transform_3, window_bounds = array<i64: 1, 256, 256>}, {transform_indices = @transform_4, window_bounds = array<i64: 8, 256>}]} {
    %c0_i32 = arith.constant 0 : i32
    %0 = arith.cmpi eq, %arg2, %c0_i32 : i32
    %1 = arith.extui %0 : i1 to i32
    %c0_i32_0 = arith.constant 0 : i32
    %2 = arith.cmpi ne, %1, %c0_i32_0 : i32
    scf.if %2 {
      %c0_10 = arith.constant 0 : index
      %c0_11 = arith.constant 0 : index
      %12 = vector.load %arg5[%c0_10, %c0_11] : memref<1x256xf32, #tpu.memory_space<vmem>>, vector<1x256xf32>
      %13 = vector.shape_cast %12 : vector<1x256xf32> to vector<1x256xf32>
      %14 = vector.broadcast %13 : vector<1x256xf32> to vector<8x256xf32>
      %c0_12 = arith.constant 0 : index
      %c0_13 = arith.constant 0 : index
      %15 = vector.load %arg8[%c0_12, %c0_13] : memref<8x256xf32, #tpu.memory_space<vmem>>, vector<8x256xf32>
      tpu.vector_store %arg8[%c0_12, %c0_13], %14 {strides = array<i32>} : memref<8x256xf32, #tpu.memory_space<vmem>>, vector<8x256xf32>,
    } else {
    }
    %c0 = arith.constant 0 : index
    %c0_1 = arith.constant 0 : index
    %3 = vector.load %arg8[%c0, %c0_1] : memref<8x256xf32, #tpu.memory_space<vmem>>, vector<8x256xf32>
    %c0_2 = arith.constant 0 : index
    %c0_3 = arith.constant 0 : index
    %4 = vector.load %arg3[%c0_2, %c0_3] : memref<8x256xf32, #tpu.memory_space<vmem>>, vector<8x256xf32>
    %c0_4 = arith.constant 0 : index
    %c0_5 = arith.constant 0 : index
    %5 = vector.load %arg4[%c0_4, %c0_5] : memref<256x256xf32, #tpu.memory_space<vmem>>, vector<256x256xf32>
    %cst = arith.constant dense<0.000000e+00> : vector<8x256xf32>
    %6 = tpu.matmul %4, %5, %cst {dimension_numbers = #tpu.dot_dimension_numbers<[1], [0], [0], [1], [0, 0, 1, 1], [], []>} : vector<8x256xf32>, vector<256x256xf32>, vector<8x256xf32> -> vector<8x256xf32>
    %7 = arith.addf %3, %6 : vector<8x256xf32>
    %c0_6 = arith.constant 0 : index
    %c0_7 = arith.constant 0 : index
    %8 = vector.load %arg8[%c0_6, %c0_7] : memref<8x256xf32, #tpu.memory_space<vmem>>, vector<8x256xf32>
    tpu.vector_store %arg8[%c0_6, %c0_7], %7 {strides = array<i32>} : memref<8x256xf32, #tpu.memory_space<vmem>>, vector<8x256xf32>,
    %c0_i32_8 = arith.constant 0 : i32
    %9 = arith.cmpi eq, %arg2, %c0_i32_8 : i32
    %10 = arith.extui %9 : i1 to i32
    %c0_i32_9 = arith.constant 0 : i32
    %11 = arith.cmpi ne, %10, %c0_i32_9 : i32
    scf.if %11 {
      %c0_10 = arith.constant 0 : index
      %c0_11 = arith.constant 0 : index
      %12 = vector.load %arg8[%c0_10, %c0_11] : memref<8x256xf32, #tpu.memory_space<vmem>>, vector<8x256xf32>
      %c0_12 = arith.constant 0 : index
      %c0_13 = arith.constant 0 : index
      %c0_14 = arith.constant 0 : index
      %13 = vector.load %arg6[%c0_12, %c0_13, %c0_14] : memref<1x256x256xf32, #tpu.memory_space<vmem>>, vector<1x256x256xf32>
      %14 = vector.shape_cast %13 : vector<1x256x256xf32> to vector<256x256xf32>
      %cst_15 = arith.constant dense<0.000000e+00> : vector<8x256xf32>
      %15 = tpu.matmul %12, %14, %cst_15 {dimension_numbers = #tpu.dot_dimension_numbers<[1], [0], [0], [1], [0, 0, 1, 1], [], []>} : vector<8x256xf32>, vector<256x256xf32>, vector<8x256xf32> -> vector<8x256xf32>
      %c0_16 = arith.constant 0 : index
      %c0_17 = arith.constant 0 : index
      %16 = vector.load %arg7[%c0_16, %c0_17] : memref<8x256xf32, #tpu.memory_space<vmem>>, vector<8x256xf32>
      tpu.vector_store %arg7[%c0_16, %c0_17], %15 {strides = array<i32>} : memref<8x256xf32, #tpu.memory_space<vmem>>, vector<8x256xf32>,
    } else {
    }
    return
  }
  func.func @transform_0(%arg0: i32, %arg1: i32, %arg2: i32) -> (i32, i32) {
    %c0_i32 = arith.constant 0 : i32
    return %arg0, %arg2 : i32, i32
  }
  func.func @transform_1(%arg0: i32, %arg1: i32, %arg2: i32) -> (i32, i32) {
    %c0_i32 = arith.constant 0 : i32
    return %arg2, %arg1 : i32, i32
  }
  func.func @transform_2(%arg0: i32, %arg1: i32, %arg2: i32) -> (i32, i32) {
    %c0_i32 = arith.constant 0 : i32
    %c0_i32_0 = arith.constant 0 : i32
    return %c0_i32, %arg1 : i32, i32
  }
  func.func @transform_3(%arg0: i32, %arg1: i32, %arg2: i32) -> (i32, i32, i32) {
    %c0_i32 = arith.constant 0 : i32
    %c0_i32_0 = arith.constant 0 : i32
    %c0_i32_1 = arith.constant 0 : i32
    return %arg1, %c0_i32, %c0_i32_0 : i32, i32, i32
  }
  func.func @transform_4(%arg0: i32, %arg1: i32, %arg2: i32) -> (i32, i32) {
    %c0_i32 = arith.constant 0 : i32
    return %arg0, %arg1 : i32, i32
  }
}

</mosaic_0001>

<bundles_post_ra>
// kernel: tpu_custom_call.1
= control target key start
LH: loop header
LB: loop body
LE: loop exit
PB: predicated region body
PF: predicated region fallthrough
CT: control target
= control target key end

     0   :  { %9 = vsyncpa [#allocation4], 0  ;;  %s1252_s0 = inlined_call_operand.hbm [shape: f32[16,256], index: 0, kind: input, shape index: {}]   ;;  %s1253_s1 = inlined_call_operand.hbm [shape: f32[256,256], index: 1, kind: input, shape index: {}]   ;;  %s1254_s2 = inlined_call_operand.vmem [shape: f32[1,256], index: 2, kind: input, shape index: {}]   ;;  %s1255_s3 = inlined_call_operand.hbm [shape: f32[1,256,256], index: 3, kind: input, shape index: {}]   ;;  %s1256_s4 = inlined_call_operand.hbm [shape: f32[16,256], index: 4, kind: output, shape index: {}]  }
   0x1   :  { %11 = vsyncpa [#allocation4 + $0x1], 0 }
   0x2   :  { %12 = vsyncpa [#allocation7], 0 }
   0x3   :  { %13 = vsyncpa [#allocation5], 0 }
   0x4   :  { %15 = vsyncpa [#allocation5 + $0x1], 0  ;;  %s1061_s15 = smov 0   ;;  %s1063_s16 = smov 0  }
   0x5   :  { %s1065_s17 = smov 0   ;;  %s1067_s18 = smov 0  }
   0x6   :  { %s1069_s19 = smov 0   ;;  %s1071_s20 = smov 0  }
   0x7 LB: > { %s757_s21 = sadd.s32 4294967295, %s1028_s20   ;;  %s758_s22 = sadd.s32 4294967294, %s1028_s20   ;;  %s1028_s20 = sphi %s1071_s20, %s21_s20   ;;  %s1024_s19 = sphi %s1069_s19, %s1276_s19   ;;  %s1020_s18 = sphi %s1067_s18, %s1275_s18   ;;  %s1016_s17 = sphi %s1065_s17, %s1274_s17   ;;  %s1012_s16 = sphi %s1063_s16, %s1273_s16   ;;  %s1008_s15 = sphi %s1061_s15, %s1272_s15  }
   0x8   : > { %p62_p0 = scmp.ne.s32.totalorder %s1012_s16, %s1008_s15  ;;  %p1095_p1 = scmp.eq.s32.totalorder %s757_s21, 0 }
   0x9   : > { %p1099_p2 = scmp.eq.s32.totalorder %s757_s21, 1  ;;  %p174_p3 = scmp.eq.s32.totalorder %s758_s22, 1 }
   0xa   : > { %s1260_s23 = scalar_select %p1095_p1, 1, 0 }
   0xb   : > { %p1105_p4 = por %p1095_p1, %p62_p0  ;;  %p759_p5 = scmp.ge.s32.totalorder %s1028_s20, 1 }
   0xc   : > { %p1110_p6 = por %p174_p3, %p62_p0  ;;  %p181_p7 = scmp.lt.s32.totalorder %s1028_s20, 3 }
   0xd   : > { %s1262_s25 = scalar_select %p1105_p4, 1, 0 }
   0xe   : > { %s1263_s26 = scalar_select %p1110_p6, 1, 0 }
   0xf   : > { %p1115_p8 = pnand %p759_p5, %p181_p7  ;;  %s1030_s28 = smov [#allocation6]  }
  0x10   : > { %s199_s29 = sshll.u32 %s1030_s28, 4  ;;  %s1031_s5 = smov [#allocation8]   ;;  %s200_s29 = int_to_ptr.vmem [resolvable:$true] %s199_s29 }
  0x11   : > { %p791_p9 = pneg %p1115_p8  ;;  %s223_s6 = sshll.u32 %s1031_s5, 4  ;;  %s224_s6 = int_to_ptr.vmem [resolvable:$true] %s223_s6 }
  0x12   : > { %s875_s7 = scalar_lea.vmem %s200_s29, 8192  ;;  %p883_p5 = scmp.lt.s32.totalorder %s200_s29, %s200_s29 }
  0x13   : > { %p1124_p11 = pnand %p791_p9, %p1095_p1  ;;  %p876_p13 = scmp.ne.s32.totalorder %s200_s29, %s875_s7 }
  0x14   : > { %p884_p7 = scmp.lt.s32.totalorder %s875_s7, %s875_s7 }
  0x15   : > { %p866_p12 = pneg %p1124_p11 }
  0x16   : > { %p885_p10 = por %p884_p7, %p883_p5 }
  0x17   : > { %p878_p0 = pnand %p876_p13, %p866_p12 }
  0x19   : > { %p879_p3 = pneg %p878_p0 }
  0x1b   : > { %p886_p9 = pnand %p885_p10, %p879_p3 }
  0x1d   : > { %889 = shalt.err (!%p886_p9)
}
  0x1e   : > { %s1032_s8 = smov 256   ;;  %s1033_s9 = smov 16  }
  0x1f   : > { %794 = dma.hbm_to_vmem [thread:$0]  (!%p1124_p11), %s1253_s1, 8192, %s200_s29, [#allocation7], %s1032_s8, %s1032_s8, %s1033_s9  }
  0x20   : > { %s901_s12 = scalar_lea.vmem %s224_s6, 8192  ;;  %p909_p1 = scmp.lt.s32.totalorder %s224_s6, %s224_s6 }
  0x21   : > { %p902_p6 = scmp.ne.s32.totalorder %s224_s6, %s901_s12  ;;  %p910_p4 = scmp.lt.s32.totalorder %s901_s12, %s901_s12 }
  0x23   : > { %p904_p13 = pnand %p902_p6, %p866_p12  ;;  %p911_p5 = por %p910_p4, %p909_p1 }
  0x25   : > { %p905_p0 = pneg %p904_p13 }
  0x27   : > { %p912_p10 = pnand %p911_p5, %p905_p0 }
  0x29   : > { %915 = shalt.err (!%p912_p10)
}
  0x2a   : > { %797 = dma.hbm_to_vmem [thread:$0]  (!%p1124_p11), %s1255_s3, 8192, %s224_s6, [#allocation7], %s1032_s8, %s1032_s8, %s1033_s9  }
  0x2b   : > { %s40_s21 = sadd.s32 1, %s1024_s19  ;;  %s49_s22 = sadd.s32 1, %s1016_s17 }
  0x2c   : > { %p42_p1 = scmp.ge.s32.totalorder %s40_s21, 2  ;;  %p56_p4 = scmp.ne.s32.totalorder %s1016_s17, %s1012_s16 }
  0x2d   : > { %p57_p6 = scmp.eq.s32.totalorder %s1028_s20, 0  ;;  %p808_p12 = scmp.lt.s32.totalorder %s1028_s20, 2 }
  0x2e   : > { %s1278_s21 = smov (%p42_p1, %s40_s21), 0  ;;  %p1156_p7 = por %p1099_p2, %p56_p4 }
  0x2f   : > { %p58_p3 = por %p57_p6, %p56_p4  ;;  %s44_s29 = ssub.s32 %s1024_s19, %s1278_s21 }
  0x30   : > { %s237_s30 = sand.u32 1, %s1016_s17   ;;  %p47_p9 = scmp.eq.s32.totalorder %s44_s29, 0 }
  0x31   : > { %s764_s5 = sshll.u32 %s237_s30, 4  ;;  %s777_s6 = sshll.u32 %s1024_s19, 8 }
  0x32   : > { %s1165_s7 = scalar_select %p47_p9, %s1016_s17, %s49_s22  }
  0x33   : > { %s249_s10 = scalar_lea.hbm %s1252_s0, %s777_s6  ;;  %s241_s11 = scalar_lea.vmem [#allocation3], %s764_s5 }
  0x34   : > { %s251_s12 = sshll.u32 %s241_s11, 4  ;;  %p1172_p11 = pnand %p808_p12, %p58_p3  ;;  %s252_s12 = int_to_ptr.vmem [resolvable:$true] %s251_s12 }
  0x35   : > { %s238_s13 = scalar_lea.sflag [#allocation4], %s237_s30  ;;  %s929_s14 = scalar_lea.vmem %s252_s12, 256 }
  0x36   : > { %p918_p2 = pneg %p1172_p11  ;;  %p930_p13 = scmp.ne.s32.totalorder %s252_s12, %s929_s14 }
  0x37   : > { %s1034_s22 = smov [#allocation3]  }
  0x38   : > { %p932_p0 = pnand %p930_p13, %p918_p2  ;;  %s934_s29 = sshll.u32 %s1034_s22, 4  ;;  %s935_s29 = int_to_ptr.vmem [resolvable:$false] %s934_s29 }
  0x39   : > { %s936_s6 = scalar_lea.vmem %s935_s29, 512  ;;  %p937_p10 = scmp.lt.s32.totalorder %s252_s12, %s935_s29 }
  0x3a   : > { %p933_p5 = pneg %p932_p0  ;;  %p938_p1 = scmp.lt.s32.totalorder %s936_s6, %s929_s14 }
  0x3c   : > { %p939_p4 = por %p938_p1, %p937_p10 }
  0x3e   : > { %p940_p6 = pnand %p939_p4, %p933_p5 }
  0x40   : > { %943 = shalt.err (!%p940_p6)
}
  0x41   : > { %801 = dma.hbm_to_vmem [thread:$0]  (!%p1172_p11), %s249_s10, 256, %s252_s12, %s238_s13  }
  0x42   : > { %260 = sbr.rel (%p1115_p8) target bundleno = 546 (0x222), region = 36  ;;  %s1183_s30 = sand.u32 (!%p1115_p8), 1, %s1012_s16  }
  0x43   : > { %s768_s5 = sshll.u32 (!%p1115_p8), %s1183_s30, 4  ;;  %s263_s8 = scalar_lea.sflag (!%p1115_p8), [#allocation4], %s1183_s30 }
  0x44   : > { %s1189_s9 = scalar_lea.vmem (!%p1115_p8), [#allocation3], %s768_s5  ;;  %p1268_p12 = scmp.ne.s32.totalorder (!%p1115_p8), %s1262_s25, 0 }
  0x47   : > { %995 = dma.done.wait (%p1268_p12), %s263_s8, 256  }
  0x48   : > { %997 = vsyncadd (%p1268_p12), %s263_s8, 4294967040  ;;  %p1269_p3 = scmp.ne.s32.totalorder %s1260_s23, 0 }
  0x4a   : > { %999 = dma.done.wait (%p1269_p3), [#allocation7], 16384  }
  0x4b   : > { %1001 = vsyncadd (%p1269_p3), [#allocation7], 4294950912  ;;  %v365_v0 = vld [vmem:[#allocation6 + $0xf8] sm:$0xff]  ;;  %v364_v1 = vld [vmem:[#allocation6 + $0xf0] sm:$0xff]  ;;  %s302_s27 = scalar_lea.vmem [#allocation9], %s768_s5  ;;  %s778_s11 = sshll.u32 %s1020_s18, 8 }
  0x4c   : > { %v363_v2 = vld [vmem:[#allocation6 + $0xe8] sm:$0xff]  ;;  %398 = vmatprep.subr.mxu0 %v365_v0  ;;  %v362_v3 = vld [vmem:[#allocation6 + $0xe0] sm:$0xff]  ;;  %v361_v4 = vld [vmem:[#allocation6 + $0xd8] sm:$0xff]  ;;  %s632_s10 = sshll.u32 %s302_s27, 4  ;;  %s630_s13 = scalar_lea.hbm %s1256_s4, %s778_s11  ;;  %s1207_s10 = int_to_ptr.vmem [resolvable:$true] %s632_s10 }
  0x4d   : > { %399 = vmatpush1.msra.mxu0 %v364_v1  ;;  %v360_v5 = vld [vmem:[#allocation6 + $0xd0] sm:$0xff]  ;;  %v359_v6 = vld [vmem:[#allocation6 + $0xc8] sm:$0xff]  ;;  %v358_v7 = vld [vmem:[#allocation6 + $0xc0] sm:$0xff]  ;;  %s616_s14 = scalar_lea.sflag [#allocation5], %s1183_s30  ;;  %s944_s22 = scalar_lea.vmem %s1207_s10, 256 }
  0x4e   : > { %400 = vmatprep.subr.mxu0 %v363_v2  ;;  %v357_v8 = vld [vmem:[#allocation6 + $0xb8] sm:$0xff]  ;;  %v356_v9 = vld [vmem:[#allocation6 + $0xb0] sm:$0xff]  ;;  %v355_v10 = vld [vmem:[#allocation6 + $0xa8] sm:$0xff]  ;;  %p945_p8 = scmp.ne.s32.totalorder %s1207_s10, %s944_s22  ;;  %s1035_s18 = smov [#allocation9]  }
  0x4f   : > { %401 = vmatpush1.msra.mxu0 %v362_v3  ;;  %v354_v11 = vld [vmem:[#allocation6 + $0xa0] sm:$0xff]  ;;  %v353_v12 = vld [vmem:[#allocation6 + $0x98] sm:$0xff]  ;;  %v352_v13 = vld [vmem:[#allocation6 + $0x90] sm:$0xff]  ;;  %s948_s29 = sshll.u32 %s1035_s18, 4  ;;  %s949_s29 = int_to_ptr.vmem [resolvable:$false] %s948_s29 }
  0x50   : > { %402 = vmatprep.subr.mxu0 %v361_v4  ;;  %v351_v14 = vld [vmem:[#allocation6 + $0x88] sm:$0xff]  ;;  %v350_v15 = vld [vmem:[#allocation6 + $0x80] sm:$0xff]  ;;  %v349_v16 = vld [vmem:[#allocation6 + $0x78] sm:$0xff]  ;;  %p946_p9 = pnand %p945_p8, %p1156_p7  ;;  %s950_s6 = scalar_lea.vmem %s949_s29, 512 }
  0x51   : > { %403 = vmatpush1.msra.mxu0 %v360_v5  ;;  %v348_v17 = vld [vmem:[#allocation6 + $0x70] sm:$0xff]  ;;  %v347_v18 = vld [vmem:[#allocation6 + $0x68] sm:$0xff]  ;;  %v346_v19 = vld [vmem:[#allocation6 + $0x60] sm:$0xff]  ;;  %p951_p2 = scmp.lt.s32.totalorder %s1207_s10, %s949_s29  ;;  %p952_p13 = scmp.lt.s32.totalorder %s950_s6, %s944_s22 }
  0x52   : > { %404 = vmatprep.subr.mxu0 %v359_v6  ;;  %v345_v20 = vld [vmem:[#allocation6 + $0x58] sm:$0xff]  ;;  %v344_v21 = vld [vmem:[#allocation6 + $0x50] sm:$0xff]  ;;  %v343_v22 = vld [vmem:[#allocation6 + $0x48] sm:$0xff]  ;;  %p947_p11 = pneg %p946_p9 }
  0x53   : > { %405 = vmatpush1.msra.mxu0 %v358_v7  ;;  %v342_v23 = vld [vmem:[#allocation6 + $0x40] sm:$0xff]  ;;  %v341_v24 = vld [vmem:[#allocation6 + $0x38] sm:$0xff]  ;;  %v508_v27 = vld [vmem:[#allocation8 + $0xf0] sm:$0xff]  ;;  %p953_p0 = por %p952_p13, %p951_p2 }
  0x54   : > { %406 = vmatprep.subr.mxu0 %v357_v8  ;;  %v333_v25 = vld [vmem:[%s1189_s9 + $0x8] sm:$0xff]  ;;  %v340_v29 = vld [vmem:[#allocation6 + $0x30] sm:$0xff]  ;;  %v506_v30 = vld [vmem:[#allocation8 + $0xe0] sm:$0xff] }
  0x55   : > { %407 = vmatpush1.msra.mxu0 %v356_v9  ;;  %462 = vmatprep.mubr.f32.mxu0 %v333_v25  ;;  %v509_v26 = vld [vmem:[#allocation8 + $0xf8] sm:$0xff]  ;;  %v507_v28 = vld [vmem:[#allocation8 + $0xe8] sm:$0xff]  ;;  %v338_v33 = vld [vmem:[#allocation6 + $0x20] sm:$0xff]  ;;  %p954_p5 = pnand %p953_p0, %p947_p11 }
  0x56   : > { %408 = vmatprep.subr.mxu0 %v355_v10  ;;  %542 = vmatprep.subr.mxu1 %v509_v26  ;;  %v339_v31 = vld [vmem:[#allocation6 + $0x28] sm:$0xff]  ;;  %v505_v32 = vld [vmem:[#allocation8 + $0xd8] sm:$0xff]  ;;  %v504_v34 = vld [vmem:[#allocation8 + $0xd0] sm:$0xff] }
  0x57   : > { %409 = vmatpush1.msra.mxu0 %v354_v11  ;;  %543 = vmatpush1.msra.mxu1 %v508_v27  ;;  %v337_v35 = vld [vmem:[#allocation6 + $0x18] sm:$0xff]  ;;  %v503_v36 = vld [vmem:[#allocation8 + $0xc8] sm:$0xff]  ;;  %v336_v37 = vld [vmem:[#allocation6 + $0x10] sm:$0xff] }
  0x58   : > { %410 = vmatprep.subr.mxu0 %v353_v12  ;;  %544 = vmatprep.subr.mxu1 %v507_v28  ;;  %v502_v38 = vld [vmem:[#allocation8 + $0xc0] sm:$0xff]  ;;  %v335_v39 = vld [vmem:[#allocation6 + $0x8] sm:$0xff]  ;;  %v501_v40 = vld [vmem:[#allocation8 + $0xb8] sm:$0xff] }
  0x59   : > { %411 = vmatpush1.msra.mxu0 %v352_v13  ;;  %545 = vmatpush1.msra.mxu1 %v506_v30  ;;  %v334_v41 = vld [vmem:[#allocation6] sm:$0xff]  ;;  %v500_v42 = vld [vmem:[#allocation8 + $0xb0] sm:$0xff]  ;;  %v397_v43 = vld [vmem:[#allocation6 + $0x1f8] sm:$0xff] }
  0x5a   : > { %412 = vmatprep.subr.mxu0 %v351_v14  ;;  %546 = vmatprep.subr.mxu1 %v505_v32  ;;  %v499_v44 = vld [vmem:[#allocation8 + $0xa8] sm:$0xff]  ;;  %v396_v45 = vld [vmem:[#allocation6 + $0x1f0] sm:$0xff]  ;;  %v498_v46 = vld [vmem:[#allocation8 + $0xa0] sm:$0xff] }
  0x5b   : > { %413 = vmatpush1.msra.mxu0 %v350_v15  ;;  %547 = vmatpush1.msra.mxu1 %v504_v34  ;;  %v395_v47 = vld [vmem:[#allocation6 + $0x1e8] sm:$0xff]  ;;  %v497_v48 = vld [vmem:[#allocation8 + $0x98] sm:$0xff]  ;;  %v394_v49 = vld [vmem:[#allocation6 + $0x1e0] sm:$0xff] }
  0x5c   : > { %414 = vmatprep.subr.mxu0 %v349_v16  ;;  %548 = vmatprep.subr.mxu1 %v503_v36  ;;  %v496_v50 = vld [vmem:[#allocation8 + $0x90] sm:$0xff]  ;;  %v393_v51 = vld [vmem:[#allocation6 + $0x1d8] sm:$0xff]  ;;  %v495_v52 = vld [vmem:[#allocation8 + $0x88] sm:$0xff] }
  0x5d   : > { %415 = vmatpush1.msra.mxu0 %v348_v17  ;;  %549 = vmatpush1.msra.mxu1 %v502_v38  ;;  %v392_v53 = vld [vmem:[#allocation6 + $0x1d0] sm:$0xff]  ;;  %v494_v54 = vld [vmem:[#allocation8 + $0x80] sm:$0xff]  ;;  %v391_v55 = vld [vmem:[#allocation6 + $0x1c8] sm:$0xff] }
  0x5e   : > { %416 = vmatprep.subr.mxu0 %v347_v18  ;;  %550 = vmatprep.subr.mxu1 %v501_v40  ;;  %v493_v56 = vld [vmem:[#allocation8 + $0x78] sm:$0xff]  ;;  %v390_v57 = vld [vmem:[#allocation6 + $0x1c0] sm:$0xff]  ;;  %v492_v58 = vld [vmem:[#allocation8 + $0x70] sm:$0xff] }
  0x5f   : > { %417 = vmatpush1.msra.mxu0 %v346_v19  ;;  %551 = vmatpush1.msra.mxu1 %v500_v42  ;;  %v389_v59 = vld [vmem:[#allocation6 + $0x1b8] sm:$0xff]  ;;  %v491_v60 = vld [vmem:[#allocation8 + $0x68] sm:$0xff]  ;;  %v388_v61 = vld [vmem:[#allocation6 + $0x1b0] sm:$0xff] }
  0x60   : > { %418 = vmatprep.subr.mxu0 %v345_v20  ;;  %552 = vmatprep.subr.mxu1 %v499_v44  ;;  %v490_v62 = vld [vmem:[#allocation8 + $0x60] sm:$0xff]  ;;  %v387_v63 = vld [vmem:[#allocation6 + $0x1a8] sm:$0xff]  ;;  %v489_v0 = vld [vmem:[#allocation8 + $0x58] sm:$0xff] }
  0x61   : > { %419 = vmatpush1.msra.mxu0 %v344_v21  ;;  %553 = vmatpush1.msra.mxu1 %v498_v46  ;;  %v386_v1 = vld [vmem:[#allocation6 + $0x1a0] sm:$0xff]  ;;  %v488_v2 = vld [vmem:[#allocation8 + $0x50] sm:$0xff]  ;;  %v385_v3 = vld [vmem:[#allocation6 + $0x198] sm:$0xff] }
  0x62   : > { %420 = vmatprep.subr.mxu0 %v343_v22  ;;  %554 = vmatprep.subr.mxu1 %v497_v48  ;;  %v487_v4 = vld [vmem:[#allocation8 + $0x48] sm:$0xff]  ;;  %v384_v5 = vld [vmem:[#allocation6 + $0x190] sm:$0xff]  ;;  %v486_v6 = vld [vmem:[#allocation8 + $0x40] sm:$0xff] }
  0x63   : > { %421 = vmatpush1.msra.mxu0 %v342_v23  ;;  %555 = vmatpush1.msra.mxu1 %v496_v50  ;;  %v383_v7 = vld [vmem:[#allocation6 + $0x188] sm:$0xff]  ;;  %v485_v8 = vld [vmem:[#allocation8 + $0x38] sm:$0xff]  ;;  %v382_v9 = vld [vmem:[#allocation6 + $0x180] sm:$0xff] }
  0x64   : > { %422 = vmatprep.subr.mxu0 %v341_v24  ;;  %556 = vmatprep.subr.mxu1 %v495_v52  ;;  %v484_v10 = vld [vmem:[#allocation8 + $0x30] sm:$0xff]  ;;  %v381_v11 = vld [vmem:[#allocation6 + $0x178] sm:$0xff]  ;;  %v483_v12 = vld [vmem:[#allocation8 + $0x28] sm:$0xff] }
  0x65   : > { %423 = vmatpush1.msra.mxu0 %v340_v29  ;;  %557 = vmatpush1.msra.mxu1 %v494_v54  ;;  %v380_v13 = vld [vmem:[#allocation6 + $0x170] sm:$0xff]  ;;  %v482_v14 = vld [vmem:[#allocation8 + $0x20] sm:$0xff]  ;;  %v379_v15 = vld [vmem:[#allocation6 + $0x168] sm:$0xff] }
  0x66   : > { %424 = vmatprep.subr.mxu0 %v339_v31  ;;  %558 = vmatprep.subr.mxu1 %v493_v56  ;;  %v481_v16 = vld [vmem:[#allocation8 + $0x18] sm:$0xff]  ;;  %v378_v17 = vld [vmem:[#allocation6 + $0x160] sm:$0xff]  ;;  %v480_v18 = vld [vmem:[#allocation8 + $0x10] sm:$0xff] }
  0x67   : > { %425 = vmatpush1.msra.mxu0 %v338_v33  ;;  %559 = vmatpush1.msra.mxu1 %v492_v58  ;;  %v377_v19 = vld [vmem:[#allocation6 + $0x158] sm:$0xff]  ;;  %v479_v20 = vld [vmem:[#allocation8 + $0x8] sm:$0xff]  ;;  %v376_v21 = vld [vmem:[#allocation6 + $0x150] sm:$0xff] }
  0x68   : > { %426 = vmatprep.subr.mxu0 %v337_v35  ;;  %560 = vmatprep.subr.mxu1 %v491_v60  ;;  %v478_v22 = vld [vmem:[#allocation8] sm:$0xff]  ;;  %v375_v23 = vld [vmem:[#allocation6 + $0x148] sm:$0xff]  ;;  %v541_v24 = vld [vmem:[#allocation8 + $0x1f8] sm:$0xff] }
  0x69   : > { %427 = vmatpush1.msra.mxu0 %v336_v37  ;;  %561 = vmatpush1.msra.mxu1 %v490_v62  ;;  %v374_v25 = vld [vmem:[#allocation6 + $0x140] sm:$0xff]  ;;  %v540_v26 = vld [vmem:[#allocation8 + $0x1f0] sm:$0xff]  ;;  %v373_v27 = vld [vmem:[#allocation6 + $0x138] sm:$0xff] }
  0x6a   : > { %428 = vmatprep.subr.mxu0 %v335_v39  ;;  %562 = vmatprep.subr.mxu1 %v489_v0  ;;  %v539_v28 = vld [vmem:[#allocation8 + $0x1e8] sm:$0xff]  ;;  %v372_v29 = vld [vmem:[#allocation6 + $0x130] sm:$0xff]  ;;  %v538_v30 = vld [vmem:[#allocation8 + $0x1e0] sm:$0xff] }
  0x6b   : > { %429 = vmatpush1.msra.mxu0 %v334_v41  ;;  %563 = vmatpush1.msra.mxu1 %v488_v2  ;;  %v371_v31 = vld [vmem:[#allocation6 + $0x128] sm:$0xff]  ;;  %v537_v32 = vld [vmem:[#allocation8 + $0x1d8] sm:$0xff]  ;;  %v370_v33 = vld [vmem:[#allocation6 + $0x120] sm:$0xff]  ;;  %v318_v2 = vlaneseq }
  0x6c   : > { %430 = vmatprep.subr.mxu0 %v397_v43  ;;  %564 = vmatprep.subr.mxu1 %v487_v4  ;;  %v536_v34 = vld [vmem:[#allocation8 + $0x1d0] sm:$0xff]  ;;  %v369_v35 = vld [vmem:[#allocation6 + $0x118] sm:$0xff]  ;;  %v535_v36 = vld [vmem:[#allocation8 + $0x1c8] sm:$0xff] }
  0x6d   : > { %431 = vmatpush2.msra.mxu0 %v396_v45  ;;  %565 = vmatpush1.msra.mxu1 %v486_v6  ;;  %v368_v37 = vld [vmem:[#allocation6 + $0x110] sm:$0xff]  ;;  %v534_v38 = vld [vmem:[#allocation8 + $0x1c0] sm:$0xff]  ;;  %v367_v39 = vld [vmem:[#allocation6 + $0x108] sm:$0xff] }
  0x6e   : > { %432 = vmatprep.subr.mxu0 %v395_v47  ;;  %566 = vmatprep.subr.mxu1 %v485_v8  ;;  %v533_v40 = vld [vmem:[#allocation8 + $0x1b8] sm:$0xff]  ;;  %v366_v41 = vld [vmem:[#allocation6 + $0x100] sm:$0xff]  ;;  %v532_v42 = vld [vmem:[#allocation8 + $0x1b0] sm:$0xff] }
  0x6f   : > { %433 = vmatpush2.msra.mxu0 %v394_v49  ;;  %567 = vmatpush1.msra.mxu1 %v484_v10  ;;  %v332_v43 = vld [vmem:[%s1189_s9] sm:$0xff]  ;;  %v531_v44 = vld [vmem:[#allocation8 + $0x1a8] sm:$0xff]  ;;  %v529_v46 = vld [vmem:[#allocation8 + $0x198] sm:$0xff] }
  0x70   : > { %434 = vmatprep.subr.mxu0 %v393_v51  ;;  %568 = vmatprep.subr.mxu1 %v483_v12  ;;  %v530_v45 = vld [vmem:[#allocation8 + $0x1a0] sm:$0xff]  ;;  %v528_v47 = vld [vmem:[#allocation8 + $0x190] sm:$0xff]  ;;  %v527_v48 = vld [vmem:[#allocation8 + $0x188] sm:$0xff] }
  0x71   : > { %435 = vmatpush2.msra.mxu0 %v392_v53  ;;  %569 = vmatpush1.msra.mxu1 %v482_v14  ;;  %v526_v49 = vld [vmem:[#allocation8 + $0x180] sm:$0xff]  ;;  %v525_v50 = vld [vmem:[#allocation8 + $0x178] sm:$0xff]  ;;  %v524_v51 = vld [vmem:[#allocation8 + $0x170] sm:$0xff] }
  0x72   : > { %436 = vmatprep.subr.mxu0 %v391_v55  ;;  %570 = vmatprep.subr.mxu1 %v481_v16  ;;  %v523_v52 = vld [vmem:[#allocation8 + $0x168] sm:$0xff]  ;;  %v522_v53 = vld [vmem:[#allocation8 + $0x160] sm:$0xff]  ;;  %v521_v54 = vld [vmem:[#allocation8 + $0x158] sm:$0xff] }
  0x73   : > { %437 = vmatpush2.msra.mxu0 %v390_v57  ;;  %571 = vmatpush1.msra.mxu1 %v480_v18  ;;  %v520_v55 = vld [vmem:[#allocation8 + $0x150] sm:$0xff]  ;;  %v519_v56 = vld [vmem:[#allocation8 + $0x148] sm:$0xff]  ;;  %v518_v57 = vld [vmem:[#allocation8 + $0x140] sm:$0xff] }
  0x74   : > { %438 = vmatprep.subr.mxu0 %v389_v59  ;;  %572 = vmatprep.subr.mxu1 %v479_v20  ;;  %v517_v58 = vld [vmem:[#allocation8 + $0x138] sm:$0xff]  ;;  %v516_v59 = vld [vmem:[#allocation8 + $0x130] sm:$0xff]  ;;  %v515_v60 = vld [vmem:[#allocation8 + $0x128] sm:$0xff] }
  0x75   : > { %439 = vmatpush2.msra.mxu0 %v388_v61  ;;  %573 = vmatpush1.msra.mxu1 %v478_v22  ;;  %v514_v61 = vld [vmem:[#allocation8 + $0x120] sm:$0xff]  ;;  %v513_v62 = vld [vmem:[#allocation8 + $0x118] sm:$0xff]  ;;  %v511_v0 = vld [vmem:[#allocation8 + $0x108] sm:$0xff] }
  0x76   : > { %440 = vmatprep.subr.mxu0 %v387_v63  ;;  %574 = vmatprep.subr.mxu1 %v541_v24  ;;  %v512_v63 = vld [vmem:[#allocation8 + $0x110] sm:$0xff]  ;;  %v316_v6 = vld [vmem:[%s1254_s2] sm:$0x3] }
  0x77   : > { %441 = vmatpush2.msra.mxu0 %v386_v1  ;;  %575 = vmatpush2.msra.mxu1 %v540_v26  ;;  %v510_v1 = vld [vmem:[#allocation8 + $0x100] sm:$0xff] }
  0x78   : > { %442 = vmatprep.subr.mxu0 %v385_v3  ;;  %576 = vmatprep.subr.mxu1 %v539_v28  ;;  %v319_v3 = vshrl.u32 %v318_v2, 7 }
  0x79   : > { %443 = vmatpush2.msra.mxu0 %v384_v5  ;;  %577 = vmatpush2.msra.mxu1 %v538_v30 }
  0x7a   : > { %444 = vmatprep.subr.mxu0 %v383_v7  ;;  %578 = vmatprep.subr.mxu1 %v537_v32  ;;  %v324_v4 = vsub.s32 1, %v319_v3  ;;  %v320_v5 = vsub.s32 0, %v319_v3 }
  0x7b   : > { %445 = vmatpush2.msra.mxu0 %v382_v9  ;;  %579 = vmatpush2.msra.mxu1 %v536_v34 }
  0x7c   : > { %446 = vmatprep.subr.mxu0 %v381_v11  ;;  %580 = vmatprep.subr.mxu1 %v535_v36  ;;  %v325_v7 = vrot.slane %v316_v6, %v324_v4  ;;  %v321_v8 = vrot.slane %v316_v6, %v320_v5 }
  0x7d   : > { %447 = vmatpush2.msra.mxu0 %v380_v13  ;;  %581 = vmatpush2.msra.mxu1 %v534_v38 }
  0x7e   : > { %448 = vmatprep.subr.mxu0 %v379_v15  ;;  %582 = vmatprep.subr.mxu1 %v533_v40 }
  0x7f   : > { %449 = vmatpush2.msra.mxu0 %v378_v17  ;;  %583 = vmatpush2.msra.mxu1 %v532_v42 }
  0x80   : > { %450 = vmatprep.subr.mxu0 %v377_v19  ;;  %584 = vmatprep.subr.mxu1 %v531_v44 }
  0x81   : > { %451 = vmatpush2.msra.mxu0 %v376_v21  ;;  %585 = vmatpush2.msra.mxu1 %v530_v45 }
  0x82   : > { %452 = vmatprep.subr.mxu0 %v375_v23  ;;  %586 = vmatprep.subr.mxu1 %v529_v46 }
  0x83   : > { %453 = vmatpush2.msra.mxu0 %v374_v25  ;;  %587 = vmatpush2.msra.mxu1 %v528_v47 }
  0x84   : > { %454 = vmatprep.subr.mxu0 %v373_v27  ;;  %588 = vmatprep.subr.mxu1 %v527_v48 }
  0x85   : > { %455 = vmatpush2.msra.mxu0 %v372_v29  ;;  %589 = vmatpush2.msra.mxu1 %v526_v49 }
  0x86   : > { %456 = vmatprep.subr.mxu0 %v371_v31  ;;  %590 = vmatprep.subr.mxu1 %v525_v50 }
  0x87   : > { %457 = vmatpush2.msra.mxu0 %v370_v33  ;;  %591 = vmatpush2.msra.mxu1 %v524_v51 }
  0x88   : > { %458 = vmatprep.subr.mxu0 %v369_v35  ;;  %592 = vmatprep.subr.mxu1 %v523_v52 }
  0x89   : > { %459 = vmatpush2.msra.mxu0 %v368_v37  ;;  %593 = vmatpush2.msra.mxu1 %v522_v53 }
  0x8a   : > { %460 = vmatprep.subr.mxu0 %v367_v39  ;;  %594 = vmatprep.subr.mxu1 %v521_v54 }
  0x8b   : > { %461 = vmatpush2.msra.mxu0 %v366_v41  ;;  %595 = vmatpush2.msra.mxu1 %v520_v55 }
  0x8c   : > { %463 = vmatmul.mubr.f32.vlgmr.msra.gmra.mxu0 %v332_v43  ;;  %596 = vmatprep.subr.mxu1 %v519_v56 }
  0x8d   : > { %597 = vmatpush2.msra.mxu1 %v518_v57 }
  0x8e   : > { %598 = vmatprep.subr.mxu1 %v517_v58 }
  0x8f   : > { %599 = vmatpush2.msra.mxu1 %v516_v59 }
  0x90   : > { %600 = vmatprep.subr.mxu1 %v515_v60 }
  0x91   : > { %601 = vmatpush2.msra.mxu1 %v514_v61 }
  0x92   : > { %602 = vmatprep.subr.mxu1 %v513_v62 }
  0x93   : > { %603 = vmatpush2.msra.mxu1 %v512_v63 }
  0x94   : > { %604 = vmatprep.subr.mxu1 %v511_v0 }
  0x95   : > { %605 = vmatpush2.msra.mxu1 %v510_v1 }
 0x14c   : > { %v464_v9 = vpop.f32.mrf.mxu0 }
 0x14d   : > { %v469_v12 = vadd.f32 %v464_v9, %v321_v8 }
 0x14e   : > { %v466_v10 = vpop.f32.mrf.mxu0 }
 0x14f   : > { %v470_v11 = vadd.f32 %v466_v10, %v325_v7 }
 0x151   : > { %606 = vmatprep.mubr.f32.mxu1 %v470_v11 }
 0x152   : > { %607 = vmatmul.mubr.f32.vlgmr.msra.gmra.mxu1 %v469_v12 }
 0x212   : > { %v608_v13 = vpop.f32.mrf.mxu1 }
 0x213   : > { %613 = vst [vmem:[%s302_s27] sm:$0xff] %v608_v13 }
 0x214   : > { %v610_v14 = vpop.f32.mrf.mxu1 }
 0x215   : > { %614 = vst [vmem:[%s302_s27 + $0x8] sm:$0xff] %v610_v14 }
 0x216   : > { %957 = shalt.err (!%p954_p5)
}
 0x217   : > { %s958_s5 = scalar_lea.hbm %s630_s13, 256  ;;  %s962_s9 = scalar_lea.hbm %s1256_s4, 512 }
 0x218   : > { %p959_p10 = scmp.ne.s32.totalorder %s630_s13, %s958_s5  ;;  %p963_p6 = scmp.lt.s32.totalorder %s630_s13, %s1256_s4 }
 0x219   : > { %p964_p12 = scmp.lt.s32.totalorder %s962_s9, %s958_s5 }
 0x21a   : > { %p960_p1 = pnand %p959_p10, %p1156_p7 }
 0x21b   : > { %p965_p3 = por %p964_p12, %p963_p6 }
 0x21c   : > { %p961_p4 = pneg %p960_p1 }
 0x21e   : > { %p966_p8 = pnand %p965_p3, %p961_p4 }
 0x220   : > { %969 = shalt.err (!%p966_p8)
}
 0x221   : > { %789 = dma.vmem_to_hbm [thread:$0]  (%p1156_p7), %s1207_s10, 256, %s630_s13, %s616_s14  }
 0x222 PF: > { %s644_s27 = sand.u32 1, %s1008_s15   ;;  %p1270_p9 = scmp.ne.s32.totalorder %s1263_s26, 0 }
 0x223   : > { %p1271_p11 = scmp.ge.s32.totalorder %s1028_s20, 2  ;;  %s645_s11 = scalar_lea.sflag [#allocation5], %s644_s27 }
 0x225   : > { %p803_p2 = pnand %p1271_p11, %p1270_p9 }
 0x227   : > { %p804_p13 = pneg %p803_p2 }
 0x229   : > { %1003 = dma.done.wait (%p804_p13), %s645_s11, 256  }
 0x22a   : > { %1005 = vsyncadd (%p804_p13), %s645_s11, 4294967040  ;;  %s21_s20 = sadd.s32 1, %s1028_s20   ;;  %s1272_s15 = smov %s1012_s16 }
 0x22b   : > { %p18_p0 = scmp.ge.s32.totalorder %s21_s20, 4   ;;  %s1273_s16 = smov %s1016_s17 }
 0x22c   : > { %s1274_s17 = smov %s1165_s7  ;;  %s1275_s18 = smov %s1024_s19 }
 0x22d   : > { %s1276_s19 = smov %s1278_s21  ;;  %20 = sbr.rel (!%p18_p0) target bundleno = 7 (0x7), region = 102 }
 0x232   :  { %650 = vsyncpa [#allocation4], 1 }
 0x233   :  { %652 = vsyncpa [#allocation4 + $0x1], 1 }
 0x234   :  { %653 = vsyncpa [#allocation7], 1 }
 0x235   :  { %654 = vsyncpa [#allocation5], 1 }
 0x236   :  { %656 = vsyncpa [#allocation5 + $0x1], 1 }

</bundles_post_ra>
